<compile_context>
chip_gen: v5e
topology: v5e:2x2
jax: 0.10.0
libtpu: 0.0.40
codegen_flags: <defaults>
</compile_context>

<pallas_src>
import functools

import jax
import jax.numpy as jnp
from jax import lax
from jax.experimental import pallas as pl
from jax.experimental.pallas import tpu as pltpu

# Synthetic TokenType enum values (stand-ins for molT's TokenType.ATOM / BOND).
TOKEN_TYPE_ATOM = 1
TOKEN_TYPE_BOND = 2

MAX_TOKEN_TILE = 2048  # tokens per grid step (capped; divides L in practice)


def _pos_embed_kernel(idx_ref, lp_ref, tok_ref, out_ref, *, num_idx):
    """One grid step: TOKEN_TILE tokens of one batch element.

    idx_ref: (TT, K)    int32   row indices into this batch's lp table
    lp_ref:  (L, D)     float32 full LP-embedding table for this batch element
    tok_ref: (TT, 1)    int32   token type ids (sublane-major column)
    out_ref: (TT, K*D)  float32 gathered + masked position embeddings
    """
    lp = lp_ref[...]                                    # (L, D)
    seq_len = lp.shape[0]
    idx = idx_ref[...]                                  # (TT, K)
    tt = idx.shape[0]

    # Lane iota over the gather axis; idx columns are sublane-major, so each
    # compare is a lane-broadcast on the VPU.
    iota = lax.broadcasted_iota(jnp.int32, (tt, seq_len), 1)

    parts = []
    for k in range(num_idx):                            # static unroll (K small)
        onehot = (idx[:, k:k + 1] == iota).astype(lp.dtype)        # (TT, L)
        parts.append(jnp.dot(onehot, lp,
                             preferred_element_type=jnp.float32))  # (TT, D)
    gathered = jnp.concatenate(parts, axis=-1)          # (TT, K*D) lane-dense

    tok = tok_ref[...]                                  # (TT, 1)
    keep = (tok == TOKEN_TYPE_ATOM) | (tok == TOKEN_TYPE_BOND)
    out_ref[...] = jnp.where(keep, gathered, 0.0).astype(out_ref.dtype)


def position_embedder(pos_embed_idxs, lp_embeds, token_type_ids, *,
                      token_tile=None):
    """JAX wrapper mirroring PositionEmbedder.forward (eval mode).

    pos_embed_idxs: int array reshapeable to (B, L, K)
    lp_embeds:      float array reshapeable to (B, L, D)
    token_type_ids: (B, L) int array
    Returns float32 (B, L, K*D).
    """
    B, L = token_type_ids.shape
    idx = pos_embed_idxs.reshape(B, L, -1).astype(jnp.int32)    # (B, L, K)
    lp = lp_embeds.reshape(B, L, -1).astype(jnp.float32)        # (B, L, D)
    K = idx.shape[-1]
    D = lp.shape[-1]
    E = K * D

    if token_tile is None:
        token_tile = min(L, MAX_TOKEN_TILE)
    assert L % token_tile == 0, "L must be a multiple of the token tile"

    tok = token_type_ids.astype(jnp.int32).reshape(B, L, 1)     # sublane-major

    grid = (B, L // token_tile)
    kernel = functools.partial(_pos_embed_kernel, num_idx=K)

    cost = pl.CostEstimate(
        flops=2 * B * L * K * L * D,                 # one-hot matmuls
        transcendentals=0,
        bytes_accessed=(idx.size * 4 + lp.size * 4 + tok.size * 4
                        + B * L * E * 4),
    )

    out = pl.pallas_call(
        kernel,
        out_shape=jax.ShapeDtypeStruct((B, L, E), jnp.float32),
        grid=grid,
        in_specs=[
            # packed indices: one DMA / BlockSpec for all K lookups
            pl.BlockSpec((pl.Squeezed(), token_tile, K),
                         lambda b, t: (b, t, 0)),
            # full per-batch LP table (constant across the token axis)
            pl.BlockSpec((pl.Squeezed(), L, D),
                         lambda b, t: (b, 0, 0)),
            # token types as a sublane-major column
            pl.BlockSpec((pl.Squeezed(), token_tile, 1),
                         lambda b, t: (b, t, 0)),
        ],
        out_specs=pl.BlockSpec((pl.Squeezed(), token_tile, E),
                               lambda b, t: (b, t, 0)),
        compiler_params=pltpu.CompilerParams(
            dimension_semantics=("parallel", "parallel")),
        cost_estimate=cost,
    )(idx, lp, tok)

    return out


def _reference(pos_embed_idxs, lp_embeds, token_type_ids):
    """Pure-JAX reference of the PyTorch forward (eval path)."""
    B, L = token_type_ids.shape
    idx = pos_embed_idxs.reshape(B, L, -1).astype(jnp.int32)
    lp = lp_embeds.reshape(B, L, -1).astype(jnp.float32)
    gathered = jax.vmap(lambda i, t: t[i])(idx, lp)     # (B, L, K, D)
    pos = gathered.reshape(B, L, -1)
    keep = ((token_type_ids == TOKEN_TYPE_ATOM)
            | (token_type_ids == TOKEN_TYPE_BOND))
    return jnp.where(keep[..., None], pos, 0.0)


if __name__ == "__main__":
    key = jax.random.PRNGKey(0)
    k_idx, k_lp, k_tok = jax.random.split(key, 3)

    B, L, K, D = 2, 128, 4, 32          # 2 molecules x 128 tokens, E = 128

    pos_embed_idxs = jax.random.randint(k_idx, (B, L, K), 0, L, jnp.int32)
    lp_embeds = jax.random.normal(k_lp, (B, L, D), jnp.float32)
    token_type_ids = jax.random.randint(k_tok, (B, L), 0, 4, jnp.int32)

    out = position_embedder(pos_embed_idxs, lp_embeds, token_type_ids)
    out = jax.block_until_ready(out)

    ref = _reference(pos_embed_idxs, lp_embeds, token_type_ids)

    assert out.shape == (B, L, K * D)
    assert jnp.allclose(out, ref, atol=1e-5, rtol=1e-5)
    print("KERNEL_OK")
</pallas_src>

<mosaic_0001>
module attributes {stable_mosaic.version = 11 : i64} {
  func.func @_pos_embed_kernel(%arg0: i32, %arg1: i32, %arg2: memref<1x128x4xi32, #tpu.memory_space<vmem>>, %arg3: memref<1x128x32xf32, #tpu.memory_space<vmem>>, %arg4: memref<1x128x1xi32, #tpu.memory_space<vmem>>, %arg5: memref<1x128x128xf32, #tpu.memory_space<vmem>>) attributes {dimension_semantics = [#tpu.dimension_semantics<parallel>, #tpu.dimension_semantics<parallel>], iteration_bounds = array<i64: 2, 1>, scalar_prefetch = 0 : i64, scratch_operands = 0 : i64, tpu.core_type = #tpu.core_type<tc>, window_params = [{transform_indices = @transform_0, window_bounds = array<i64: 1, 128, 4>}, {transform_indices = @transform_1, window_bounds = array<i64: 1, 128, 32>}, {transform_indices = @transform_2, window_bounds = array<i64: 1, 128, 1>}, {transform_indices = @transform_3, window_bounds = array<i64: 1, 128, 128>}]} {
    %c0 = arith.constant 0 : index
    %c0_0 = arith.constant 0 : index
    %c0_1 = arith.constant 0 : index
    %0 = vector.load %arg3[%c0, %c0_0, %c0_1] : memref<1x128x32xf32, #tpu.memory_space<vmem>>, vector<1x128x32xf32>
    %1 = vector.shape_cast %0 : vector<1x128x32xf32> to vector<128x32xf32>
    %c0_2 = arith.constant 0 : index
    %c0_3 = arith.constant 0 : index
    %c0_4 = arith.constant 0 : index
    %2 = vector.load %arg2[%c0_2, %c0_3, %c0_4] : memref<1x128x4xi32, #tpu.memory_space<vmem>>, vector<1x128x4xi32>
    %3 = vector.shape_cast %2 : vector<1x128x4xi32> to vector<128x4xi32>
    %4 = tpu.iota {dimensions = array<i32: 1>} : vector<128x128xi32>
    %5 = vector.extract_strided_slice %3 {offsets = [0, 0], sizes = [128, 1], strides = [1, 1]} : vector<128x4xi32> to vector<128x1xi32>
    %6 = vector.broadcast %5 : vector<128x1xi32> to vector<128x128xi32>
    %7 = arith.cmpi eq, %6, %4 : vector<128x128xi32>
    %8 = arith.extui %7 : vector<128x128xi1> to vector<128x128xi32>
    %9 = arith.sitofp %8 : vector<128x128xi32> to vector<128x128xf32>
    %cst = arith.constant dense<0.000000e+00> : vector<128x32xf32>
    %10 = tpu.matmul %9, %1, %cst {dimension_numbers = #tpu.dot_dimension_numbers<[1], [0], [0], [1], [0, 0, 1, 1], [], []>} : vector<128x128xf32>, vector<128x32xf32>, vector<128x32xf32> -> vector<128x32xf32>
    %11 = vector.extract_strided_slice %3 {offsets = [0, 1], sizes = [128, 1], strides = [1, 1]} : vector<128x4xi32> to vector<128x1xi32>
    %12 = vector.broadcast %11 : vector<128x1xi32> to vector<128x128xi32>
    %13 = arith.cmpi eq, %12, %4 : vector<128x128xi32>
    %14 = arith.extui %13 : vector<128x128xi1> to vector<128x128xi32>
    %15 = arith.sitofp %14 : vector<128x128xi32> to vector<128x128xf32>
    %cst_5 = arith.constant dense<0.000000e+00> : vector<128x32xf32>
    %16 = tpu.matmul %15, %1, %cst_5 {dimension_numbers = #tpu.dot_dimension_numbers<[1], [0], [0], [1], [0, 0, 1, 1], [], []>} : vector<128x128xf32>, vector<128x32xf32>, vector<128x32xf32> -> vector<128x32xf32>
    %17 = vector.extract_strided_slice %3 {offsets = [0, 2], sizes = [128, 1], strides = [1, 1]} : vector<128x4xi32> to vector<128x1xi32>
    %18 = vector.broadcast %17 : vector<128x1xi32> to vector<128x128xi32>
    %19 = arith.cmpi eq, %18, %4 : vector<128x128xi32>
    %20 = arith.extui %19 : vector<128x128xi1> to vector<128x128xi32>
    %21 = arith.sitofp %20 : vector<128x128xi32> to vector<128x128xf32>
    %cst_6 = arith.constant dense<0.000000e+00> : vector<128x32xf32>
    %22 = tpu.matmul %21, %1, %cst_6 {dimension_numbers = #tpu.dot_dimension_numbers<[1], [0], [0], [1], [0, 0, 1, 1], [], []>} : vector<128x128xf32>, vector<128x32xf32>, vector<128x32xf32> -> vector<128x32xf32>
    %23 = vector.extract_strided_slice %3 {offsets = [0, 3], sizes = [128, 1], strides = [1, 1]} : vector<128x4xi32> to vector<128x1xi32>
    %24 = vector.broadcast %23 : vector<128x1xi32> to vector<128x128xi32>
    %25 = arith.cmpi eq, %24, %4 : vector<128x128xi32>
    %26 = arith.extui %25 : vector<128x128xi1> to vector<128x128xi32>
    %27 = arith.sitofp %26 : vector<128x128xi32> to vector<128x128xf32>
    %cst_7 = arith.constant dense<0.000000e+00> : vector<128x32xf32>
    %28 = tpu.matmul %27, %1, %cst_7 {dimension_numbers = #tpu.dot_dimension_numbers<[1], [0], [0], [1], [0, 0, 1, 1], [], []>} : vector<128x128xf32>, vector<128x32xf32>, vector<128x32xf32> -> vector<128x32xf32>
    %29 = tpu.concatenate %10, %16, %22, %28 in 1 : vector<128x32xf32>, vector<128x32xf32>, vector<128x32xf32>, vector<128x32xf32> -> vector<128x128xf32>
    %c0_8 = arith.constant 0 : index
    %c0_9 = arith.constant 0 : index
    %c0_10 = arith.constant 0 : index
    %30 = vector.load %arg4[%c0_8, %c0_9, %c0_10] : memref<1x128x1xi32, #tpu.memory_space<vmem>>, vector<1x128x1xi32>
    %31 = vector.shape_cast %30 : vector<1x128x1xi32> to vector<128x1xi32>
    %c1_i32 = arith.constant 1 : i32
    %32 = vector.broadcast %c1_i32 : i32 to vector<128x1xi32>
    %33 = arith.cmpi eq, %31, %32 : vector<128x1xi32>
    %c2_i32 = arith.constant 2 : i32
    %34 = vector.broadcast %c2_i32 : i32 to vector<128x1xi32>
    %35 = arith.cmpi eq, %31, %34 : vector<128x1xi32>
    %36 = arith.ori %33, %35 : vector<128x1xi1>
    %cst_11 = arith.constant 0.000000e+00 : f32
    %37 = vector.shape_cast %36 : vector<128x1xi1> to vector<128x1xi1>
    %38 = vector.broadcast %37 : vector<128x1xi1> to vector<128x128xi1>
    %39 = vector.broadcast %cst_11 : f32 to vector<128x128xf32>
    %40 = arith.select %38, %29, %39 : vector<128x128xi1>, vector<128x128xf32>
    %c0_12 = arith.constant 0 : index
    %c0_13 = arith.constant 0 : index
    %c0_14 = arith.constant 0 : index
    %41 = vector.load %arg5[%c0_12, %c0_13, %c0_14] : memref<1x128x128xf32, #tpu.memory_space<vmem>>, vector<1x128x128xf32>
    %42 = vector.shape_cast %41 : vector<1x128x128xf32> to vector<128x128xf32>
    %43 = vector.shape_cast %40 : vector<128x128xf32> to vector<1x128x128xf32>
    tpu.vector_store %arg5[%c0_12, %c0_13, %c0_14], %43 {strides = array<i32>} : memref<1x128x128xf32, #tpu.memory_space<vmem>>, vector<1x128x128xf32>,
    return
  }
  func.func @transform_0(%arg0: i32, %arg1: i32) -> (i32, i32, i32) {
    %c0_i32 = arith.constant 0 : i32
    %c0_i32_0 = arith.constant 0 : i32
    return %arg0, %arg1, %c0_i32 : i32, i32, i32
  }
  func.func @transform_1(%arg0: i32, %arg1: i32) -> (i32, i32, i32) {
    %c0_i32 = arith.constant 0 : i32
    %c0_i32_0 = arith.constant 0 : i32
    %c0_i32_1 = arith.constant 0 : i32
    return %arg0, %c0_i32, %c0_i32_0 : i32, i32, i32
  }
  func.func @transform_2(%arg0: i32, %arg1: i32) -> (i32, i32, i32) {
    %c0_i32 = arith.constant 0 : i32
    %c0_i32_0 = arith.constant 0 : i32
    return %arg0, %arg1, %c0_i32 : i32, i32, i32
  }
  func.func @transform_3(%arg0: i32, %arg1: i32) -> (i32, i32, i32) {
    %c0_i32 = arith.constant 0 : i32
    %c0_i32_0 = arith.constant 0 : i32
    return %arg0, %arg1, %c0_i32 : i32, i32, i32
  }
}

</mosaic_0001>

<bundles_post_ra>
// kernel: tpu_custom_call.1
= control target key start
LH: loop header
LB: loop body
LE: loop exit
PB: predicated region body
PF: predicated region fallthrough
CT: control target
= control target key end

     0   :  { %8 = vsyncpa [#allocation3], 0  ;;  %s2477_s0 = inlined_call_operand.vmem [shape: s32[2,128,4], index: 0, kind: input, shape index: {}]   ;;  %s2478_s1 = inlined_call_operand.vmem [shape: f32[2,128,32], index: 1, kind: input, shape index: {}]   ;;  %s2479_s2 = inlined_call_operand.vmem [shape: s32[2,128,1], index: 2, kind: input, shape index: {}]   ;;  %s2480_s3 = inlined_call_operand.hbm [shape: f32[2,128,128], index: 3, kind: output, shape index: {}]  }
   0x1   :  { %10 = vsyncpa [#allocation3 + $0x1], 0  ;;  %s1819_s12 = smov 0   ;;  %s1821_s13 = smov 0  }
   0x2   :  { %s1823_s14 = smov 0   ;;  %s1825_s15 = smov 0  }
   0x3   :  { %s1827_s16 = smov 0   ;;  %s1829_s17 = smov 0  }
   0x4 LB: > { %s1480_s18 = sadd.s32 4294967295, %s1787_s17   ;;  %s1481_s19 = sadd.s32 4294967294, %s1787_s17   ;;  %s1787_s17 = sphi %s1829_s17, %s16_s17   ;;  %s1783_s16 = sphi %s1827_s16, %s2487_s16   ;;  %s1779_s15 = sphi %s1825_s15, %s2486_s15   ;;  %s1775_s14 = sphi %s1823_s14, %s2485_s14   ;;  %s1771_s13 = sphi %s1821_s13, %s2484_s13   ;;  %s1767_s12 = sphi %s1819_s12, %s2483_s12  }
   0x5   : > { %s28_s20 = sadd.s32 1, %s1783_s16  ;;  %s119_s21 = sadd.s32 1, %s1775_s14 }
   0x6   : > { %p30_p0 = scmp.ge.s32.totalorder %s28_s20, 2  ;;  %p129_p1 = scmp.ne.s32.totalorder %s1775_s14, %s1771_s13 }
   0x7   : > { %p130_p2 = scmp.eq.s32.totalorder %s1480_s18, 1  ;;  %p135_p3 = scmp.ne.s32.totalorder %s1771_s13, %s1767_s12 }
   0x8   : > { %s2489_s20 = smov (%p30_p0, %s28_s20), 0  ;;  %p136_p5 = scmp.eq.s32.totalorder %s1481_s19, 1 }
   0x9   : > { %p1859_p4 = por %p130_p2, %p129_p1  ;;  %s114_s23 = ssub.s32 %s1783_s16, %s2489_s20 }
   0xa   : > { %p1484_p6 = scmp.ge.s32.totalorder %s1787_s17, 1  ;;  %p117_p7 = scmp.eq.s32.totalorder %s114_s23, 0 }
   0xb   : > { %p1866_p8 = por %p136_p5, %p135_p3  ;;  %p188_p9 = scmp.lt.s32.totalorder %s1787_s17, 3 }
   0xc   : > { %s1872_s25 = scalar_select %p117_p7, %s1775_s14, %s119_s21  }
   0xd   : > { %p189_p10 = pnand %p1484_p6, %p188_p9 }
   0xe   : > { %p231_p11 = scmp.lt.s32.totalorder (!%p189_p10), %s1779_s15, 1  ;;  %s1794_s10 = smov (!%p189_p10), 32  }
   0xf   : > { %192 = sbr.rel (%p189_p10) target bundleno = 646 (0x286), region = 32  ;;  %s1795_s11 = smov (!%p189_p10), 64  }
  0x10   : > { %s1796_s18 = smov (!%p189_p10), 96   ;;  %s227_s19 = sand.u32 (!%p189_p10), 1, %s1771_s13  }
  0x11   : > { %s1485_s21 = sshll.u32 (!%p189_p10), %s227_s19, 7  ;;  %s1354_s4 = scalar_lea.sflag (!%p189_p10), [#allocation3], %s227_s19 }
  0x12   : > { %s2348_s23 = scalar_lea.vmem (!%p189_p10), [#allocation2], %s1485_s21 }
  0x14   : > { %v1789_v0 = vmov 0   ;;  %s232_s26 = scalar_select %p231_p11, %s1779_s15, 1  ;;  %v1790_v15 = vmov 1   ;;  %v1791_v23 = vmov 2   ;;  %v1792_v38 = vmov 3  }
  0x15   : > { %1696 = vset.pattern.permute.xlu2 %v1789_v0  ;;  %1695 = vset.pattern.permute.xlu1 %v1789_v0  ;;  %v288_v39 = vlaneseq  ;;  %v1793_v44 = vmov 1.0  }
  0x16   : > { %1694 = vset.pattern.permute.xlu0 %v1789_v0  ;;  %s1879_s27 = sshll.u32 %s232_s26, 7  ;;  %s1628_s26 = sshll.u32 %s1779_s15, 7 }
  0x17   : > { %s1885_s30 = scalar_lea.vmem %s2477_s0, %s1879_s27  ;;  %s1951_s6 = scalar_lea.vmem %s2478_s1, %s1879_s27  ;;  %v2005_v40 = vand.u32 127, %v288_v39 }
  0x18   : > { %v1888_v1 = vld [vmem:[%s1885_s30 + $0x20] sm:$0xff]  ;;  %v1891_v2 = vld [vmem:[%s1885_s30 + $0x10] sm:$0xff]  ;;  %v1900_v4 = vld [vmem:[%s1885_s30 + $0x28] sm:$0xff]  ;;  %s2119_s9 = scalar_lea.vmem %s2479_s2, %s1879_s27  ;;  %s1367_s29 = scalar_lea.hbm %s2480_s3, %s1628_s26 }
  0x19   : > { %v1894_v3 = vld [vmem:[%s1885_s30] sm:$0xff]  ;;  %303 = vperm.xlu2 %1696, %v1888_v1   ;;  %297 = vperm.xlu1 %1695, %v1891_v2   ;;  %v1903_v5 = vld [vmem:[%s1885_s30 + $0x18] sm:$0xff]  ;;  %v1906_v6 = vld [vmem:[%s1885_s30 + $0x8] sm:$0xff]  ;;  %s1368_s15 = sshll.u32 %s2348_s23, 4  ;;  %s1369_s15 = int_to_ptr.vmem [resolvable:$true] %s1368_s15 }
  0x1a   : > { %291 = vperm.xlu0 %1694, %v1894_v3   ;;  %v1912_v7 = vld [vmem:[%s1885_s30 + $0x40] sm:$0xff]  ;;  %v1915_v8 = vld [vmem:[%s1885_s30 + $0x38] sm:$0xff]  ;;  %v1918_v9 = vld [vmem:[%s1885_s30 + $0x30] sm:$0xff] }
  0x1b   : > { %v1924_v10 = vld [vmem:[%s1885_s30 + $0x58] sm:$0xff]  ;;  %v1927_v11 = vld [vmem:[%s1885_s30 + $0x50] sm:$0xff]  ;;  %v1930_v12 = vld [vmem:[%s1885_s30 + $0x48] sm:$0xff] }
  0x1c   : > { %v1936_v13 = vld [vmem:[%s1885_s30 + $0x70] sm:$0xff]  ;;  %v1939_v14 = vld [vmem:[%s1885_s30 + $0x68] sm:$0xff]  ;;  %v271_v16 = vld [vmem:[%s1951_s6 + $0x78] sm:$0xff] }
  0x1d   : > { %v270_v17 = vld [vmem:[%s1951_s6 + $0x70] sm:$0xff]  ;;  %386 = vmatpush.msra.mxu0 %v271_v16  ;;  %547 = vmatpush.msra.mxu1 %v271_v16  ;;  %v269_v18 = vld [vmem:[%s1951_s6 + $0x68] sm:$0xff]  ;;  %v268_v19 = vld [vmem:[%s1951_s6 + $0x60] sm:$0xff] }
  0x1e   : > { %708 = vmatpush.msra.mxu2 %v271_v16  ;;  %869 = vmatpush.msra.mxu3 %v271_v16  ;;  %v267_v20 = vld [vmem:[%s1951_s6 + $0x58] sm:$0xff]  ;;  %v266_v21 = vld [vmem:[%s1951_s6 + $0x50] sm:$0xff]  ;;  %v265_v22 = vld [vmem:[%s1951_s6 + $0x48] sm:$0xff] }
  0x1f   : > { %387 = vmatpush.msra.mxu0 %v270_v17  ;;  %548 = vmatpush.msra.mxu1 %v270_v17  ;;  %v264_v24 = vld [vmem:[%s1951_s6 + $0x40] sm:$0xff]  ;;  %v263_v25 = vld [vmem:[%s1951_s6 + $0x38] sm:$0xff]  ;;  %v262_v26 = vld [vmem:[%s1951_s6 + $0x30] sm:$0xff] }
  0x20   : > { %709 = vmatpush.msra.mxu2 %v270_v17  ;;  %870 = vmatpush.msra.mxu3 %v270_v17  ;;  %v1973_v27 = vld [vmem:[%s1885_s30 + $0x60] sm:$0xff]  ;;  %v261_v28 = vld [vmem:[%s1951_s6 + $0x28] sm:$0xff]  ;;  %v259_v30 = vld [vmem:[%s1951_s6 + $0x18] sm:$0xff] }
  0x21   : > { %306 = vperm.xlu2 %1696, %v1900_v4   ;;  %300 = vperm.xlu1 %1695, %v1903_v5   ;;  %v260_v29 = vld [vmem:[%s1951_s6 + $0x20] sm:$0xff]  ;;  %v258_v31 = vld [vmem:[%s1951_s6 + $0x10] sm:$0xff]  ;;  %v1983_v32 = vld [vmem:[%s1885_s30 + $0x78] sm:$0xff]  ;;  %s1370_s30 = sshll.u32 %s1367_s29, 4  ;;  %s1371_s30 = int_to_ptr.hbm [resolvable:$true] %s1370_s30 }
  0x22   : > { %294 = vperm.xlu0 %1694, %v1906_v6   ;;  %388 = vmatpush.msra.mxu0 %v269_v18  ;;  %v257_v33 = vld [vmem:[%s1951_s6 + $0x8] sm:$0xff]  ;;  %v256_v34 = vld [vmem:[%s1951_s6] sm:$0xff]  ;;  %s1723_s5 = sshra.s32 %s1371_s30, 4  ;;  %s1724_s5 = int_to_ptr.hbm [resolvable:$true] %s1723_s5 }
  0x23   : > { %549 = vmatpush.msra.mxu1 %v269_v18  ;;  %710 = vmatpush.msra.mxu2 %v269_v18  ;;  %v1181_v39 = vld [vmem:[%s2119_s9 + $0x20] sm:$0xff]  ;;  %s1725_s6 = scalar_lea.hbm %s1724_s5, 128  ;;  %p1730_p1 = scmp.lt.s32.totalorder %s1724_s5, %s2480_s3 }
  0x24   : > { %871 = vmatpush.msra.mxu3 %v269_v18  ;;  %389 = vmatpush.msra.mxu0 %v268_v19  ;;  %p1726_p12 = scmp.ne.s32.totalorder %s1724_s5, %s1725_s6 }
  0x25   : > { %550 = vmatpush.msra.mxu1 %v268_v19  ;;  %711 = vmatpush.msra.mxu2 %v268_v19 }
  0x26   : > { %872 = vmatpush.msra.mxu3 %v268_v19  ;;  %390 = vmatpush.msra.mxu0 %v267_v20  ;;  %p1727_p13 = pnand %p1726_p12, %p1859_p4 }
  0x27   : > { %551 = vmatpush.msra.mxu1 %v267_v20  ;;  %712 = vmatpush.msra.mxu2 %v267_v20 }
  0x28   : > { %873 = vmatpush.msra.mxu3 %v267_v20  ;;  %391 = vmatpush.msra.mxu0 %v266_v21  ;;  %v1180_v20 = vld [vmem:[%s2119_s9 + $0x18] sm:$0xff]  ;;  %p1728_p0 = pneg %p1727_p13 }
  0x29   : > { %315 = vperm.xlu2 %1696, %v1912_v7   ;;  %312 = vperm.xlu1 %1695, %v1915_v8  }
  0x2a   : > { %309 = vperm.xlu0 %1694, %v1918_v9   ;;  %552 = vmatpush.msra.mxu1 %v266_v21 }
  0x2b   : > { %392 = vmatpush.msra.mxu0 %v265_v22  ;;  %713 = vmatpush.msra.mxu2 %v266_v21 }
  0x2c   : > { %553 = vmatpush.msra.mxu1 %v265_v22  ;;  %874 = vmatpush.msra.mxu3 %v266_v21 }
  0x2d   : > { %393 = vmatpush.msra.mxu0 %v264_v24  ;;  %714 = vmatpush.msra.mxu2 %v265_v22 }
  0x2e   : > { %554 = vmatpush.msra.mxu1 %v264_v24  ;;  %875 = vmatpush.msra.mxu3 %v265_v22 }
  0x2f   : > { %394 = vmatpush.msra.mxu0 %v263_v25  ;;  %715 = vmatpush.msra.mxu2 %v264_v24 }
  0x30   : > { %555 = vmatpush.msra.mxu1 %v263_v25  ;;  %876 = vmatpush.msra.mxu3 %v264_v24 }
  0x31   : > { %324 = vperm.xlu2 %1696, %v1924_v10   ;;  %321 = vperm.xlu1 %1695, %v1927_v11  }
  0x32   : > { %318 = vperm.xlu0 %1694, %v1930_v12   ;;  %395 = vmatpush.msra.mxu0 %v262_v26 }
  0x33   : > { %556 = vmatpush.msra.mxu1 %v262_v26  ;;  %716 = vmatpush.msra.mxu2 %v263_v25 }
  0x34   : > { %396 = vmatpush.msra.mxu0 %v261_v28  ;;  %877 = vmatpush.msra.mxu3 %v263_v25  ;;  %v1182_v25 = vld [vmem:[%s2119_s9 + $0x28] sm:$0xff] }
  0x35   : > { %557 = vmatpush.msra.mxu1 %v261_v28  ;;  %717 = vmatpush.msra.mxu2 %v262_v26 }
  0x36   : > { %397 = vmatpush.msra.mxu0 %v260_v29  ;;  %878 = vmatpush.msra.mxu3 %v262_v26 }
  0x37   : > { %558 = vmatpush.msra.mxu1 %v260_v29  ;;  %718 = vmatpush.msra.mxu2 %v261_v28 }
  0x38   : > { %398 = vmatpush.msra.mxu0 %v259_v30  ;;  %879 = vmatpush.msra.mxu3 %v261_v28 }
  0x39   : > { %333 = vperm.xlu2 %1696, %v1936_v13   ;;  %330 = vperm.xlu1 %1695, %v1939_v14  }
  0x3a   : > { %1699 = vset.pattern.permute.xlu0 %v1790_v15  ;;  %399 = vmatpush.msra.mxu0 %v258_v31 }
  0x3b   : > { %458 = vperm.xlu0 %1699, %v1891_v2   ;;  %559 = vmatpush.msra.mxu1 %v259_v30 }
  0x3c   : > { %400 = vmatpush.msra.mxu0 %v257_v33  ;;  %719 = vmatpush.msra.mxu2 %v260_v29 }
  0x3d   : > { %560 = vmatpush.msra.mxu1 %v258_v31  ;;  %880 = vmatpush.msra.mxu3 %v260_v29  ;;  %v1185_v29 = vld [vmem:[%s2119_s9 + $0x40] sm:$0xff] }
  0x3e   : > { %401 = vmatpush.msra.mxu0 %v256_v34  ;;  %720 = vmatpush.msra.mxu2 %v259_v30 }
  0x3f   : > { %561 = vmatpush.msra.mxu1 %v257_v33  ;;  %881 = vmatpush.msra.mxu3 %v259_v30 }
  0x40   : > { %721 = vmatpush.msra.mxu2 %v258_v31 }
  0x41   : > { %1698 = vset.pattern.permute.xlu2 %v1790_v15  ;;  %1697 = vset.pattern.permute.xlu1 %v1790_v15  ;;  %v1177_v15 = vld [vmem:[%s2119_s9] sm:$0xff] }
  0x42   : > { %455 = vperm.xlu2 %1698, %v1906_v6   ;;  %452 = vperm.xlu1 %1697, %v1894_v3  }
  0x43   : > { %473 = vperm.xlu0 %1699, %v1915_v8   ;;  %562 = vmatpush.msra.mxu1 %v256_v34 }
  0x44   : > { %722 = vmatpush.msra.mxu2 %v257_v33  ;;  %882 = vmatpush.msra.mxu3 %v258_v31 }
  0x46   : > { %723 = vmatpush.msra.mxu2 %v256_v34  ;;  %883 = vmatpush.msra.mxu3 %v257_v33  ;;  %v1178_v33 = vld [vmem:[%s2119_s9 + $0x8] sm:$0xff] }
  0x48   : > { %884 = vmatpush.msra.mxu3 %v256_v34  ;;  %v1188_v34 = vld [vmem:[%s2119_s9 + $0x58] sm:$0xff] }
  0x4a   : > { %464 = vperm.xlu2 %1698, %v1888_v1   ;;  %461 = vperm.xlu1 %1697, %v1903_v5  }
  0x4b   : > { %482 = vperm.xlu0 %1699, %v1927_v11  }
  0x52   : > { %470 = vperm.xlu2 %1698, %v1918_v9   ;;  %467 = vperm.xlu1 %1697, %v1900_v4  }
  0x53   : > { %491 = vperm.xlu0 %1699, %v1939_v14  }
  0x5a   : > { %479 = vperm.xlu2 %1698, %v1930_v12   ;;  %476 = vperm.xlu1 %1697, %v1912_v7  }
  0x5b   : > { %1700 = vset.pattern.permute.xlu0 %v1791_v23 }
  0x5c   : > { %613 = vperm.xlu0 %1700, %v1894_v3  }
  0x62   : > { %488 = vperm.xlu2 %1698, %v1973_v27   ;;  %485 = vperm.xlu1 %1697, %v1924_v10  }
  0x64   : > { %628 = vperm.xlu0 %1700, %v1900_v4  }
  0x6a   : > { %497 = vperm.xlu2 %1698, %v1983_v32   ;;  %494 = vperm.xlu1 %1697, %v1936_v13  }
  0x6c   : > { %637 = vperm.xlu0 %1700, %v1912_v7  }
  0x72   : > { %1702 = vset.pattern.permute.xlu2 %v1791_v23  ;;  %1701 = vset.pattern.permute.xlu1 %v1791_v23 }
  0x73   : > { %v1990_v35 = vpop.permute.xlu2 %303  ;;  %619 = vperm.xlu2 %1702, %v1891_v2   ;;  %616 = vperm.xlu1 %1701, %v1906_v6  }
  0x74   : > { %646 = vperm.xlu0 %1700, %v1924_v10   ;;  %vm342_vm4 = vcmp.eq.s32.totalorder %v1990_v35, %v2005_v40 }
  0x7b   : > { %v1995_v36 = vpop.permute.xlu2 %306  ;;  %625 = vperm.xlu2 %1702, %v1888_v1   ;;  %622 = vperm.xlu1 %1701, %v1903_v5  }
  0x7c   : > { %655 = vperm.xlu0 %1700, %v1936_v13   ;;  %vm343_vm5 = vcmp.eq.s32.totalorder %v1995_v36, %v2005_v40 }
  0x83   : > { %v2000_v37 = vpop.permute.xlu2 %315  ;;  %634 = vperm.xlu2 %1702, %v1915_v8   ;;  %631 = vperm.xlu1 %1701, %v1918_v9  }
  0x84   : > { %1704 = vset.pattern.permute.xlu0 %v1792_v38  ;;  %vm346_vm11 = vcmp.eq.s32.totalorder %v2000_v37, %v2005_v40 }
  0x85   : > { %777 = vperm.xlu0 %1704, %v1906_v6  }
  0x8b   : > { %v2007_v41 = vpop.permute.xlu2 %324  ;;  %v298_v42 = vpop.permute.xlu1 %297  ;;  %643 = vperm.xlu2 %1702, %v1927_v11   ;;  %640 = vperm.xlu1 %1701, %v1930_v12  }
  0x8c   : > { %v292_v43 = vpop.permute.xlu0 %291  ;;  %vm340_vm2 = vcmp.eq.s32.totalorder %v298_v42, %v2005_v40 }
  0x8d   : > { %vm338_vm0 = vcmp.eq.s32.totalorder %v292_v43, %v2005_v40  ;;  %792 = vperm.xlu0 %1704, %v1918_v9  }
  0x8e   : > { %1508 = vmatmul.msk.f32.vlgmr.msra.gmra.mxu0 %vm338_vm0, %v1793_v44 }
  0x93   : > { %v2014_v45 = vpop.permute.xlu2 %333  ;;  %v301_v46 = vpop.permute.xlu1 %300  ;;  %652 = vperm.xlu2 %1702, %v1939_v14   ;;  %649 = vperm.xlu1 %1701, %v1973_v27  }
  0x94   : > { %v295_v47 = vpop.permute.xlu0 %294  ;;  %vm341_vm3 = vcmp.eq.s32.totalorder %v301_v46, %v2005_v40  ;;  %v1183_v46 = vld [vmem:[%s2119_s9 + $0x30] sm:$0xff] }
  0x95   : > { %vm339_vm1 = vcmp.eq.s32.totalorder %v295_v47, %v2005_v40  ;;  %801 = vperm.xlu0 %1704, %v1930_v12  }
  0x96   : > { %1509 = vmatmul.msk.f32.gmra.mxu0 %vm339_vm1, %v1793_v44 }
  0x9b   : > { %v313_v48 = vpop.permute.xlu1 %312  ;;  %1703 = vset.pattern.permute.xlu2 %v1792_v38  ;;  %658 = vperm.xlu1 %1701, %v1983_v32  }
  0x9c   : > { %v310_v49 = vpop.permute.xlu0 %309  ;;  %v456_v50 = vpop.permute.xlu2 %455  ;;  %774 = vperm.xlu2 %1703, %v1894_v3   ;;  %vm345_vm10 = vcmp.eq.s32.totalorder %v313_v48, %v2005_v40 }
  0x9d   : > { %810 = vperm.xlu0 %1704, %v1973_v27   ;;  %vm344_vm7 = vcmp.eq.s32.totalorder %v310_v49, %v2005_v40  ;;  %vm500_vm8 = vcmp.eq.s32.totalorder %v456_v50, %v2005_v40  ;;  %v1186_v50 = vld [vmem:[%s2119_s9 + $0x48] sm:$0xff] }
  0x9e   : > { %1510 = vmatmul.msk.f32.gmra.mxu0 %vm340_vm2, %v1793_v44  ;;  %vm349_vm2 = vcmp.eq.s32.totalorder %v2007_v41, %v2005_v40 }
  0xa3   : > { %v2026_v51 = vpop.permute.xlu1 %321  ;;  %1705 = vset.pattern.permute.xlu1 %v1792_v38 }
  0xa4   : > { %v319_v52 = vpop.permute.xlu0 %318  ;;  %v465_v53 = vpop.permute.xlu2 %464  ;;  %783 = vperm.xlu2 %1703, %v1903_v5   ;;  %780 = vperm.xlu1 %1705, %v1891_v2   ;;  %vm348_vm0 = vcmp.eq.s32.totalorder %v2026_v51, %v2005_v40 }
  0xa5   : > { %819 = vperm.xlu0 %1704, %v1983_v32   ;;  %vm347_vm14 = vcmp.eq.s32.totalorder %v319_v52, %v2005_v40  ;;  %vm503_vm15 = vcmp.eq.s32.totalorder %v465_v53, %v2005_v40  ;;  %v1189_v53 = vld [vmem:[%s2119_s9 + $0x60] sm:$0xff] }
  0xa6   : > { %1511 = vmatmul.msk.f32.gmra.mxu0 %vm341_vm3, %v1793_v44 }
  0xab   : > { %v2033_v54 = vpop.permute.xlu1 %330 }
  0xac   : > { %v2035_v55 = vpop.permute.xlu2 %470  ;;  %789 = vperm.xlu2 %1703, %v1900_v4   ;;  %786 = vperm.xlu1 %1705, %v1888_v1  }
  0xad   : > { %1706 = vset.pattern.permute.xlu0 %v1789_v0  ;;  %v459_v56 = vpop.permute.xlu0 %458  ;;  %vm505_vm3 = vcmp.eq.s32.totalorder %v2035_v55, %v2005_v40 }
  0xae   : > { %327 = vperm.xlu0 %1706, %v1973_v27   ;;  %1512 = vmatmul.msk.f32.gmra.mxu0 %vm342_vm4, %v1793_v44  ;;  %vm501_vm9 = vcmp.eq.s32.totalorder %v459_v56, %v2005_v40 }
  0xb4   : > { %v2044_v57 = vpop.permute.xlu2 %479  ;;  %798 = vperm.xlu2 %1703, %v1912_v7   ;;  %795 = vperm.xlu1 %1705, %v1915_v8   ;;  %v453_v58 = vpop.permute.xlu1 %452 }
  0xb5   : > { %vm499_vm6 = vcmp.eq.s32.totalorder %v453_v58, %v2005_v40  ;;  %v2051_v59 = vpop.permute.xlu0 %473 }
  0xb6   : > { %1513 = vmatmul.msk.f32.gmra.mxu0 %vm343_vm5, %v1793_v44  ;;  %1540 = vmatmul.msk.f32.vlgmr.msra.gmra.mxu1 %vm499_vm6, %v1793_v44  ;;  %vm1193_vm5 = vcmp.eq.s32.totalorder %v1177_v15, 1  ;;  %vm1209_vm6 = vcmp.eq.s32.totalorder %v1177_v15, 2 }
  0xb7   : > { %336 = vperm.xlu0 %1706, %v1983_v32  }
  0xbc   : > { %v2056_v60 = vpop.permute.xlu2 %488  ;;  %807 = vperm.xlu2 %1703, %v1924_v10   ;;  %804 = vperm.xlu1 %1705, %v1927_v11   ;;  %v462_v61 = vpop.permute.xlu1 %461 }
  0xbd   : > { %v2062_v62 = vpop.permute.xlu0 %482  ;;  %vm502_vm12 = vcmp.eq.s32.totalorder %v462_v61, %v2005_v40  ;;  %v1187_v61 = vld [vmem:[%s2119_s9 + $0x50] sm:$0xff] }
  0xbe   : > { %1514 = vmatmul.msk.f32.gmra.mxu0 %vm344_vm7, %v1793_v44  ;;  %1541 = vmatmul.msk.f32.gmra.mxu1 %vm500_vm8, %v1793_v44  ;;  %vm1225_vm7 = vmor %vm1193_vm5, %vm1209_vm6  ;;  %vm506_vm8 = vcmp.eq.s32.totalorder %v2051_v59, %v2005_v40  ;;  %vm1201_vm6 = vcmp.eq.s32.totalorder %v1185_v29, 1 }
  0xbf   : > { %v1241_v16 = vsel %vm1225_vm7, 1, %v1789_v0  ;;  %vm1217_vm7 = vcmp.eq.s32.totalorder %v1185_v29, 2 }
  0xc4   : > { %v2067_v63 = vpop.permute.xlu2 %497  ;;  %816 = vperm.xlu2 %1703, %v1936_v13   ;;  %813 = vperm.xlu1 %1705, %v1939_v14   ;;  %v468_v1 = vpop.permute.xlu1 %467 }
  0xc5   : > { %v2072_v2 = vpop.permute.xlu0 %491  ;;  %vm504_vm1 = vcmp.eq.s32.totalorder %v468_v1, %v2005_v40 }
  0xc6   : > { %1515 = vmatmul.msk.f32.gmra.mxu0 %vm345_vm10, %v1793_v44  ;;  %1542 = vmatmul.msk.f32.gmra.mxu1 %vm501_vm9, %v1793_v44  ;;  %vm1196_vm10 = vcmp.eq.s32.totalorder %v1180_v20, 1 }
  0xcc   : > { %v477_v3 = vpop.permute.xlu1 %476  ;;  %1707 = vset.pattern.permute.xlu1 %v1789_v0  ;;  %1708 = vset.pattern.permute.xlu2 %v1789_v0 }
  0xcd   : > { %v620_v4 = vpop.permute.xlu2 %619  ;;  %1258 = vperm.xlu1 %1707, %v1241_v16  }
  0xce   : > { %1516 = vmatmul.msk.f32.gmra.mxu0 %vm346_vm11, %v1793_v44  ;;  %v614_v5 = vpop.permute.xlu0 %613  ;;  %1543 = vmatmul.msk.f32.gmra.mxu1 %vm502_vm12, %v1793_v44  ;;  %vm662_vm9 = vcmp.eq.s32.totalorder %v620_v4, %v2005_v40  ;;  %vm1212_vm11 = vcmp.eq.s32.totalorder %v1180_v20, 2 }
  0xcf   : > { %vm660_vm13 = vcmp.eq.s32.totalorder %v614_v5, %v2005_v40  ;;  %vm1228_vm12 = vmor %vm1196_vm10, %vm1212_vm11  ;;  %vm1194_vm11 = vcmp.eq.s32.totalorder %v1178_v33, 1 }
  0xd0   : > { %1572 = vmatmul.msk.f32.vlgmr.msra.gmra.mxu2 %vm660_vm13, %v1793_v44  ;;  %v1244_v21 = vsel %vm1228_vm12, 1, %v1789_v0  ;;  %vm507_vm13 = vcmp.eq.s32.totalorder %v477_v3, %v2005_v40  ;;  %vm1210_vm12 = vcmp.eq.s32.totalorder %v1178_v33, 2 }
  0xd4   : > { %v2085_v6 = vpop.permute.xlu1 %485 }
  0xd5   : > { %v626_v7 = vpop.permute.xlu2 %625  ;;  %1267 = vperm.xlu1 %1707, %v1244_v21  }
  0xd6   : > { %1517 = vmatmul.msk.f32.gmra.mxu0 %vm347_vm14, %v1793_v44  ;;  %v2090_v8 = vpop.permute.xlu0 %628  ;;  %1544 = vmatmul.msk.f32.gmra.mxu1 %vm503_vm15, %v1793_v44  ;;  %vm664_vm5 = vcmp.eq.s32.totalorder %v626_v7, %v2005_v40 }
  0xd7   : > { %vm665_vm10 = vcmp.eq.s32.totalorder %v2090_v8, %v2005_v40 }
  0xdc   : > { %v2093_v9 = vpop.permute.xlu1 %494 }
  0xdd   : > { %v2098_v10 = vpop.permute.xlu2 %634 }
  0xde   : > { %1518 = vmatmul.msk.f32.gmra.mxu0 %vm348_vm0, %v1793_v44  ;;  %v2101_v11 = vpop.permute.xlu0 %637  ;;  %1545 = vmatmul.msk.f32.gmra.mxu1 %vm504_vm1, %v1793_v44  ;;  %vm1198_vm0 = vcmp.eq.s32.totalorder %v1182_v25, 1  ;;  %vm1214_vm1 = vcmp.eq.s32.totalorder %v1182_v25, 2 }
  0xe5   : > { %v2108_v12 = vpop.permute.xlu2 %643  ;;  %v617_v13 = vpop.permute.xlu1 %616 }
  0xe6   : > { %vm661_vm4 = vcmp.eq.s32.totalorder %v617_v13, %v2005_v40  ;;  %1519 = vmatmul.msk.f32.gmra.mxu0 %vm349_vm2, %v1793_v44  ;;  %v2112_v14 = vpop.permute.xlu0 %646  ;;  %1546 = vmatmul.msk.f32.gmra.mxu1 %vm505_vm3, %v1793_v44  ;;  %vm1230_vm2 = vmor %vm1198_vm0, %vm1214_vm1  ;;  %vm508_vm3 = vcmp.eq.s32.totalorder %v2044_v57, %v2005_v40  ;;  %vm510_vm1 = vcmp.eq.s32.totalorder %v2085_v6, %v2005_v40 }
  0xe7   : > { %1573 = vmatmul.msk.f32.gmra.mxu2 %vm661_vm4, %v1793_v44  ;;  %v1246_v26 = vsel %vm1230_vm2, 1, %v1789_v0 }
  0xe8   : > { %1273 = vperm.xlu1 %1707, %v1246_v26  }
  0xed   : > { %v2126_v17 = vpop.permute.xlu2 %652  ;;  %v623_v18 = vpop.permute.xlu1 %622 }
  0xee   : > { %v2129_v19 = vpop.permute.xlu0 %655  ;;  %1547 = vmatmul.msk.f32.gmra.mxu1 %vm506_vm8, %v1793_v44  ;;  %vm663_vm14 = vcmp.eq.s32.totalorder %v623_v18, %v2005_v40  ;;  %vm1233_vm8 = vmor %vm1201_vm6, %vm1217_vm7  ;;  %vm511_vm6 = vcmp.eq.s32.totalorder %v2056_v60, %v2005_v40  ;;  %vm667_vm7 = vcmp.eq.s32.totalorder %v2098_v10, %v2005_v40 }
  0xef   : > { %1574 = vmatmul.msk.f32.gmra.mxu2 %vm662_vm9, %v1793_v44  ;;  %v1249_v30 = vsel %vm1233_vm8, 1, %v1789_v0  ;;  %vm509_vm9 = vcmp.eq.s32.totalorder %v2062_v62, %v2005_v40 }
  0xf0   : > { %1282 = vperm.xlu1 %1707, %v1249_v30  }
  0xf5   : > { %v632_v22 = vpop.permute.xlu1 %631 }
  0xf6   : > { %v775_v23 = vpop.permute.xlu2 %774  ;;  %1548 = vmatmul.msk.f32.gmra.mxu1 %vm507_vm13, %v1793_v44  ;;  %vm1226_vm13 = vmor %vm1194_vm11, %vm1210_vm12  ;;  %vm666_vm2 = vcmp.eq.s32.totalorder %v632_v22, %v2005_v40  ;;  %vm512_vm12 = vcmp.eq.s32.totalorder %v2072_v2, %v2005_v40 }
  0xf7   : > { %vm821_vm15 = vcmp.eq.s32.totalorder %v775_v23, %v2005_v40  ;;  %v778_v24 = vpop.permute.xlu0 %777  ;;  %1575 = vmatmul.msk.f32.gmra.mxu2 %vm663_vm14, %v1793_v44  ;;  %vm1204_vm14 = vcmp.eq.s32.totalorder %v1188_v34, 1  ;;  %v1242_v35 = vsel %vm1226_vm13, 1, %v1789_v0  ;;  %vm668_vm13 = vcmp.eq.s32.totalorder %v2101_v11, %v2005_v40 }
  0xf8   : > { %1604 = vmatmul.msk.f32.vlgmr.msra.gmra.mxu3 %vm821_vm15, %v1793_v44  ;;  %vm822_vm4 = vcmp.eq.s32.totalorder %v778_v24, %v2005_v40  ;;  %vm1220_vm15 = vcmp.eq.s32.totalorder %v1188_v34, 2  ;;  %1261 = vperm.xlu2 %1708, %v1242_v35  }
  0xf9   : > { %vm1236_vm0 = vmor %vm1204_vm14, %vm1220_vm15 }
  0xfa   : > { %v1252_v36 = vsel %vm1236_vm0, 1, %v1789_v0  ;;  %vm1202_vm0 = vcmp.eq.s32.totalorder %v1186_v50, 1 }
  0xfb   : > { %1291 = vperm.xlu1 %1707, %v1252_v36  }
  0xfd   : > { %v2146_v27 = vpop.permute.xlu1 %640 }
  0xfe   : > { %1549 = vmatmul.msk.f32.gmra.mxu1 %vm508_vm3, %v1793_v44  ;;  %vm1197_vm3 = vcmp.eq.s32.totalorder %v1181_v39, 1  ;;  %v784_v48 = vpop.permute.xlu2 %783 }
  0xff   : > { %v2150_v28 = vpop.permute.xlu0 %792  ;;  %1576 = vmatmul.msk.f32.gmra.mxu2 %vm664_vm5, %v1793_v44  ;;  %vm824_vm14 = vcmp.eq.s32.totalorder %v784_v48, %v2005_v40 }
 0x100   : > { %1605 = vmatmul.msk.f32.gmra.mxu3 %vm822_vm4, %v1793_v44  ;;  %vm1213_vm4 = vcmp.eq.s32.totalorder %v1181_v39, 2 }
 0x101   : > { %vm1229_vm5 = vmor %vm1197_vm3, %vm1213_vm4  ;;  %vm513_vm3 = vcmp.eq.s32.totalorder %v2093_v9, %v2005_v40  ;;  %vm669_vm4 = vcmp.eq.s32.totalorder %v2146_v27, %v2005_v40 }
 0x102   : > { %v1245_v41 = vsel %vm1229_vm5, 1, %v1789_v0 }
 0x103   : > { %1270 = vperm.xlu2 %1708, %v1245_v41  }
 0x105   : > { %v2158_v31 = vpop.permute.xlu1 %649 }
 0x106   : > { %1550 = vmatmul.msk.f32.gmra.mxu1 %vm509_vm9, %v1793_v44  ;;  %vm1199_vm9 = vcmp.eq.s32.totalorder %v1183_v46, 1  ;;  %v790_v56 = vpop.permute.xlu2 %789 }
 0x107   : > { %v2163_v32 = vpop.permute.xlu0 %801  ;;  %1577 = vmatmul.msk.f32.gmra.mxu2 %vm665_vm10, %v1793_v44  ;;  %vm1215_vm10 = vcmp.eq.s32.totalorder %v1183_v46, 2 }
 0x108   : > { %vm1231_vm11 = vmor %vm1199_vm9, %vm1215_vm10  ;;  %vm514_vm10 = vcmp.eq.s32.totalorder %v2067_v63, %v2005_v40 }
 0x109   : > { %v1247_v47 = vsel %vm1231_vm11, 1, %v1789_v0  ;;  %vm670_vm11 = vcmp.eq.s32.totalorder %v2108_v12, %v2005_v40 }
 0x10b   : > { %1276 = vperm.xlu2 %1708, %v1247_v47  }
 0x10d   : > { %v2172_v37 = vpop.permute.xlu1 %658 }
 0x10e   : > { %1551 = vmatmul.msk.f32.gmra.mxu1 %vm510_vm1, %v1793_v44  ;;  %vm1218_vm1 = vcmp.eq.s32.totalorder %v1186_v50, 2  ;;  %v799_v62 = vpop.permute.xlu2 %798 }
 0x10f   : > { %v2176_v38 = vpop.permute.xlu0 %810  ;;  %1578 = vmatmul.msk.f32.gmra.mxu2 %vm666_vm2, %v1793_v44  ;;  %vm1234_vm2 = vmor %vm1202_vm0, %vm1218_vm1  ;;  %vm671_vm1 = vcmp.eq.s32.totalorder %v2112_v14, %v2005_v40 }
 0x110   : > { %v1250_v51 = vsel %vm1234_vm2, 1, %v1789_v0  ;;  %vm827_vm2 = vcmp.eq.s32.totalorder %v2150_v28, %v2005_v40 }
 0x113   : > { %1285 = vperm.xlu2 %1708, %v1250_v51  }
 0x116   : > { %v781_v42 = vpop.permute.xlu1 %780  ;;  %1552 = vmatmul.msk.f32.gmra.mxu1 %vm511_vm6, %v1793_v44  ;;  %vm351_vm6 = vcmp.eq.s32.totalorder %v2033_v54, %v2005_v40  ;;  %v1179_v54 = vld [vmem:[%s2119_s9 + $0x10] sm:$0xff]  ;;  %v808_v4 = vpop.permute.xlu2 %807 }
 0x117   : > { %vm823_vm8 = vcmp.eq.s32.totalorder %v781_v42, %v2005_v40  ;;  %v2187_v43 = vpop.permute.xlu0 %819  ;;  %1579 = vmatmul.msk.f32.gmra.mxu2 %vm667_vm7, %v1793_v44  ;;  %vm1205_vm7 = vcmp.eq.s32.totalorder %v1189_v53, 1 }
 0x118   : > { %1606 = vmatmul.msk.f32.gmra.mxu3 %vm823_vm8, %v1793_v44  ;;  %vm1221_vm8 = vcmp.eq.s32.totalorder %v1189_v53, 2  ;;  %v403_v53 = vpop.f32.mrf.mxu0 }
 0x119   : > { %vm1237_vm9 = vmor %vm1205_vm7, %vm1221_vm8  ;;  %vm1203_vm8 = vcmp.eq.s32.totalorder %v1187_v61, 1 }
 0x11a   : > { %v1253_v55 = vsel %vm1237_vm9, 1, %v1789_v0  ;;  %vm1219_vm9 = vcmp.eq.s32.totalorder %v1187_v61, 2 }
 0x11b   : > { %1294 = vperm.xlu2 %1708, %v1253_v55  }
 0x11e   : > { %1553 = vmatmul.msk.f32.gmra.mxu1 %vm512_vm12, %v1793_v44  ;;  %v787_v52 = vpop.permute.xlu1 %786  ;;  %vm826_vm12 = vcmp.eq.s32.totalorder %v790_v56, %v2005_v40  ;;  %v817_v6 = vpop.permute.xlu2 %816 }
 0x11f   : > { %1580 = vmatmul.msk.f32.gmra.mxu2 %vm668_vm13, %v1793_v44  ;;  %vm825_vm5 = vcmp.eq.s32.totalorder %v787_v52, %v2005_v40  ;;  %vm352_vm13 = vcmp.eq.s32.totalorder %v2014_v45, %v2005_v40  ;;  %v1184_v45 = vld [vmem:[%s2119_s9 + $0x38] sm:$0xff] }
 0x120   : > { %v328_v49 = vpop.permute.xlu0 %327  ;;  %1607 = vmatmul.msk.f32.gmra.mxu3 %vm824_vm14, %v1793_v44  ;;  %vm1195_vm14 = vcmp.eq.s32.totalorder %v1179_v54, 1 }
 0x121   : > { %vm350_vm15 = vcmp.eq.s32.totalorder %v328_v49, %v2005_v40 }
 0x122   : > { %1520 = vmatmul.msk.f32.gmra.mxu0 %vm350_vm15, %v1793_v44  ;;  %vm1211_vm15 = vcmp.eq.s32.totalorder %v1179_v54, 2 }
 0x123   : > { %vm1227_vm0 = vmor %vm1195_vm14, %vm1211_vm15  ;;  %vm830_vm14 = vcmp.eq.s32.totalorder %v2163_v32, %v2005_v40  ;;  %vm675_vm15 = vcmp.eq.s32.totalorder %v2172_v37, %v2005_v40 }
 0x124   : > { %v1243_v58 = vsel %vm1227_vm0, 1, %v1789_v0 }
 0x125   : > { %1264 = vperm.xlu0 %1706, %v1243_v58  }
 0x126   : > { %1554 = vmatmul.msk.f32.gmra.mxu1 %vm513_vm3, %v1793_v44  ;;  %vm1200_vm3 = vcmp.eq.s32.totalorder %v1184_v45, 1  ;;  %v796_v59 = vpop.permute.xlu1 %795 }
 0x127   : > { %1581 = vmatmul.msk.f32.gmra.mxu2 %vm669_vm4, %v1793_v44  ;;  %vm1216_vm4 = vcmp.eq.s32.totalorder %v1184_v45, 2  ;;  %vm828_vm7 = vcmp.eq.s32.totalorder %v796_v59, %v2005_v40 }
 0x128   : > { %1608 = vmatmul.msk.f32.gmra.mxu3 %vm825_vm5, %v1793_v44  ;;  %vm1232_vm5 = vmor %vm1200_vm3, %vm1216_vm4  ;;  %vm835_vm4 = vcmp.eq.s32.totalorder %v817_v6, %v2005_v40 }
 0x129   : > { %v1248_v60 = vsel %vm1232_vm5, 1, %v1789_v0  ;;  %vm836_vm5 = vcmp.eq.s32.totalorder %v2187_v43, %v2005_v40 }
 0x12a   : > { %1521 = vmatmul.msk.f32.gmra.mxu0 %vm351_vm6, %v1793_v44  ;;  %vm672_vm6 = vcmp.eq.s32.totalorder %v2158_v31, %v2005_v40 }
 0x12d   : > { %1279 = vperm.xlu0 %1706, %v1248_v60   ;;  %v406_v60 = vpop.f32.mrf.mxu0 }
 0x12e   : > { %1555 = vmatmul.msk.f32.gmra.mxu1 %vm514_vm10, %v1793_v44  ;;  %vm1235_vm10 = vmor %vm1203_vm8, %vm1219_vm9  ;;  %v805_v2 = vpop.permute.xlu1 %804  ;;  %vm1143_vm8 = vcmask 523264   ;;  %vm1160_vm9 = vcmask 785408  }
 0x12f   : > { %1582 = vmatmul.msk.f32.gmra.mxu2 %vm670_vm11, %v1793_v44  ;;  %v1251_v63 = vsel %vm1235_vm10, 1, %v1789_v0  ;;  %vm673_vm11 = vcmp.eq.s32.totalorder %v2126_v17, %v2005_v40  ;;  %vm831_vm0 = vcmp.eq.s32.totalorder %v805_v2, %v2005_v40  ;;  %v337_v17 = vpop.permute.xlu0 %336 }
 0x130   : > { %1609 = vmatmul.msk.f32.gmra.mxu3 %vm826_vm12, %v1793_v44  ;;  %vm829_vm12 = vcmp.eq.s32.totalorder %v799_v62, %v2005_v40 }
 0x132   : > { %1522 = vmatmul.msk.f32.gmra.mxu0 %vm352_vm13, %v1793_v44  ;;  %vm674_vm13 = vcmp.eq.s32.totalorder %v2129_v19, %v2005_v40 }
 0x133   : > { %v564_v57 = vpop.f32.mrf.mxu1 }
 0x134   : > { %950 = vrot.lane.b32.xlu1 %v564_v57, %s1794_s10 }
 0x135   : > { %1288 = vperm.xlu0 %1706, %v1251_v63  }
 0x136   : > { %v814_v5 = vpop.permute.xlu1 %813 }
 0x137   : > { %1583 = vmatmul.msk.f32.gmra.mxu2 %vm671_vm1, %v1793_v44  ;;  %vm832_vm1 = vcmp.eq.s32.totalorder %v808_v4, %v2005_v40  ;;  %vm834_vm3 = vcmp.eq.s32.totalorder %v814_v5, %v2005_v40 }
 0x138   : > { %1610 = vmatmul.msk.f32.gmra.mxu3 %vm827_vm2, %v1793_v44  ;;  %vm833_vm2 = vcmp.eq.s32.totalorder %v2176_v38, %v2005_v40 }
 0x13b   : > { %v567_v3 = vpop.f32.mrf.mxu1 }
 0x13f   : > { %1584 = vmatmul.msk.f32.gmra.mxu2 %vm672_vm6, %v1793_v44  ;;  %vm353_vm6 = vcmp.eq.s32.totalorder %v337_v17, %v2005_v40  ;;  %v2296_v26 = vpop.permute.xlu1 %1258 }
 0x140   : > { %1611 = vmatmul.msk.f32.gmra.mxu3 %vm828_vm7, %v1793_v44  ;;  %1523 = vmatmul.msk.f32.gmra.mxu0 %vm353_vm6, %v1793_v44  ;;  %vm1126_vm7 = vcmask 261120   ;;  %vm1305_vm10 = vcmp.eq.s32.totalorder %v2296_v26, 1 }
 0x143   : > { %v570_v10 = vpop.f32.mrf.mxu1 }
 0x147   : > { %1585 = vmatmul.msk.f32.gmra.mxu2 %vm673_vm11, %v1793_v44  ;;  %v2303_v31 = vpop.permute.xlu1 %1267 }
 0x148   : > { %1612 = vmatmul.msk.f32.gmra.mxu3 %vm829_vm12, %v1793_v44  ;;  %vm1308_vm6 = vcmp.eq.s32.totalorder %v2303_v31, 1 }
 0x14b   : > { %v573_v13 = vpop.f32.mrf.mxu1 }
 0x14f   : > { %1586 = vmatmul.msk.f32.gmra.mxu2 %vm674_vm13, %v1793_v44 }
 0x150   : > { %1613 = vmatmul.msk.f32.gmra.mxu3 %vm830_vm14, %v1793_v44 }
 0x152   : > { %v2291_v24 = vpop.permute.xlu2 %1261 }
 0x153   : > { %v725_v1 = vpop.f32.mrf.mxu2  ;;  %v576_v15 = vpop.f32.mrf.mxu1  ;;  %vm1306_vm11 = vcmp.eq.s32.totalorder %v2291_v24, 1 }
 0x154   : > { %1014 = vrot.lane.b32.xlu2 %v725_v1, %s1795_s11 }
 0x157   : > { %1587 = vmatmul.msk.f32.gmra.mxu2 %vm675_vm15, %v1793_v44 }
 0x158   : > { %1614 = vmatmul.msk.f32.gmra.mxu3 %vm831_vm0, %v1793_v44 }
 0x15a   : > { %v2310_v37 = vpop.permute.xlu1 %1273 }
 0x15b   : > { %v579_v19 = vpop.f32.mrf.mxu1 }
 0x15c   : > { %952 = vrot.lane.b32.xlu2 %v567_v3, %s1794_s10 }
 0x15d   : > { %v2298_v28 = vpop.permute.xlu2 %1270 }
 0x160   : > { %1615 = vmatmul.msk.f32.gmra.mxu3 %vm832_vm1, %v1793_v44 }
 0x162   : > { %v2322_v46 = vpop.permute.xlu1 %1282 }
 0x163   : > { %v582_v22 = vpop.f32.mrf.mxu1 }
 0x165   : > { %v2308_v33 = vpop.permute.xlu2 %1276 }
 0x168   : > { %1616 = vmatmul.msk.f32.gmra.mxu3 %vm833_vm2, %v1793_v44 }
 0x16a   : > { %v728_v7 = vpop.f32.mrf.mxu2 }
 0x16d   : > { %v2315_v38 = vpop.permute.xlu2 %1285  ;;  %v2331_v52 = vpop.permute.xlu1 %1291 }
 0x170   : > { %1617 = vmatmul.msk.f32.gmra.mxu3 %vm834_vm3, %v1793_v44 }
 0x172   : > { %v731_v9 = vpop.f32.mrf.mxu2 }
 0x175   : > { %v2324_v47 = vpop.permute.xlu2 %1294 }
 0x178   : > { %1618 = vmatmul.msk.f32.gmra.mxu3 %vm835_vm4, %v1793_v44 }
 0x17a   : > { %v734_v12 = vpop.f32.mrf.mxu2 }
 0x17b   : > { %v886_v8 = vpop.f32.mrf.mxu3 }
 0x17c   : > { %1078 = vrot.lane.b32.xlu0 %v886_v8, %s1796_s18 }
 0x180   : > { %1619 = vmatmul.msk.f32.gmra.mxu3 %vm836_vm5, %v1793_v44  ;;  %v585_v44 = vpop.f32.mrf.mxu1 }
 0x182   : > { %v737_v14 = vpop.f32.mrf.mxu2 }
 0x183   : > { %v889_v11 = vpop.f32.mrf.mxu3 }
 0x184   : > { %1016 = vrot.lane.b32.xlu0 %v728_v7, %s1795_s11  ;;  %1080 = vrot.lane.b32.xlu1 %v889_v11, %s1796_s18 }
 0x188   : > { %v588_v30 = vpop.f32.mrf.mxu1 }
 0x18a   : > { %v740_v18 = vpop.f32.mrf.mxu2 }
 0x18c   : > { %954 = vrot.lane.b32.xlu0 %v570_v10, %s1794_s10  ;;  %1018 = vrot.lane.b32.xlu1 %v731_v9, %s1795_s11  ;;  %v409_v9 = vpop.f32.mrf.mxu0 }
 0x190   : > { %v591_v35 = vpop.f32.mrf.mxu1 }
 0x192   : > { %v743_v21 = vpop.f32.mrf.mxu2 }
 0x194   : > { %956 = vrot.lane.b32.xlu1 %v573_v13, %s1794_s10  ;;  %v412_v24 = vpop.f32.mrf.mxu0 }
 0x197   : > { %v2317_v42 = vpop.permute.xlu0 %1264 }
 0x198   : > { %v594_v41 = vpop.f32.mrf.mxu1  ;;  %vm1307_vm12 = vcmp.eq.s32.totalorder %v2317_v42, 1 }
 0x19a   : > { %v746_v40 = vpop.f32.mrf.mxu2 }
 0x19b   : > { %v892_v16 = vpop.f32.mrf.mxu3 }
 0x19c   : > { %1082 = vrot.lane.b32.xlu2 %v892_v16, %s1796_s18 }
 0x19f   : > { %v2326_v51 = vpop.permute.xlu0 %1279 }
 0x1a0   : > { %v597_v50 = vpop.f32.mrf.mxu1 }
 0x1a2   : > { %v749_v29 = vpop.f32.mrf.mxu2 }
 0x1a3   : > { %v895_v20 = vpop.f32.mrf.mxu3 }
 0x1a4   : > { %1020 = vrot.lane.b32.xlu2 %v734_v12, %s1795_s11  ;;  %1084 = vrot.lane.b32.xlu0 %v895_v20, %s1796_s18 }
 0x1a6   : > { %v951_v45 = vpop.permute.xlu1 %950 }
 0x1a7   : > { %v2336_v58 = vpop.permute.xlu0 %1288  ;;  %v1127_v61 = vsel %vm1126_vm7, %v403_v53, %v951_v45 }
 0x1a8   : > { %v600_v57 = vpop.f32.mrf.mxu1 }
 0x1aa   : > { %v752_v34 = vpop.f32.mrf.mxu2 }
 0x1ab   : > { %v898_v23 = vpop.f32.mrf.mxu3 }
 0x1ac   : > { %958 = vrot.lane.b32.xlu2 %v576_v15, %s1794_s10  ;;  %1022 = vrot.lane.b32.xlu0 %v737_v14, %s1795_s11 }
 0x1ad   : > { %1086 = vrot.lane.b32.xlu1 %v898_v23, %s1796_s18  ;;  %v1190_v23 = vld [vmem:[%s2119_s9 + $0x68] sm:$0xff] }
 0x1ae   : > { %v1015_v56 = vpop.permute.xlu2 %1014  ;;  %vm1206_vm15 = vcmp.eq.s32.totalorder %v1190_v23, 1  ;;  %vm1222_vm0 = vcmp.eq.s32.totalorder %v1190_v23, 2 }
 0x1af   : > { %v1144_v62 = vsel %vm1143_vm8, %v1127_v61, %v1015_v56  ;;  %vm1238_vm4 = vmor %vm1206_vm15, %vm1222_vm0  ;;  %vm1314_vm15 = vcmp.eq.s32.totalorder %v2315_v38, 1  ;;  %vm1315_vm0 = vcmp.eq.s32.totalorder %v2336_v58, 1 }
 0x1b0   : > { %v603_v4 = vpop.f32.mrf.mxu1 }
 0x1b2   : > { %v755_v39 = vpop.f32.mrf.mxu2 }
 0x1b3   : > { %v901_v25 = vpop.f32.mrf.mxu3 }
 0x1b4   : > { %960 = vrot.lane.b32.xlu0 %v579_v19, %s1794_s10  ;;  %1088 = vrot.lane.b32.xlu2 %v901_v25, %s1796_s18  ;;  %v1191_v25 = vld [vmem:[%s2119_s9 + $0x70] sm:$0xff] }
 0x1b5   : > { %1024 = vrot.lane.b32.xlu1 %v740_v18, %s1795_s11  ;;  %vm1207_vm1 = vcmp.eq.s32.totalorder %v1191_v25, 1  ;;  %vm1223_vm2 = vcmp.eq.s32.totalorder %v1191_v25, 2 }
 0x1b6   : > { %v953_v63 = vpop.permute.xlu2 %952  ;;  %vm1239_vm5 = vmor %vm1207_vm1, %vm1223_vm2  ;;  %vm1316_vm1 = vcmp.eq.s32.totalorder %v2331_v52, 1  ;;  %vm1317_vm2 = vcmp.eq.s32.totalorder %v2324_v47, 1 }
 0x1b7   : > { %v1128_v10 = vsel %vm1126_vm7, %v406_v60, %v953_v63 }
 0x1b8   : > { %v606_v15 = vpop.f32.mrf.mxu1 }
 0x1ba   : > { %v758_v48 = vpop.f32.mrf.mxu2 }
 0x1bb   : > { %v904_v27 = vpop.f32.mrf.mxu3 }
 0x1bc   : > { %1026 = vrot.lane.b32.xlu2 %v743_v21, %s1795_s11  ;;  %1090 = vrot.lane.b32.xlu0 %v904_v27, %s1796_s18  ;;  %v1192_v21 = vld [vmem:[%s2119_s9 + $0x78] sm:$0xff]  ;;  %s1729_s9 = scalar_lea.hbm %s2480_s3, 256 }
 0x1bd   : > { %962 = vrot.lane.b32.xlu1 %v582_v22, %s1794_s10  ;;  %vm1208_vm13 = vcmp.eq.s32.totalorder %v1192_v21, 1  ;;  %vm1224_vm14 = vcmp.eq.s32.totalorder %v1192_v21, 2  ;;  %p1731_p2 = scmp.lt.s32.totalorder %s1729_s9, %s1725_s6 }
 0x1be   : > { %vm1240_vm3 = vmor %vm1208_vm13, %vm1224_vm14  ;;  %vm1312_vm13 = vcmp.eq.s32.totalorder %v2326_v51, 1  ;;  %vm1313_vm14 = vcmp.eq.s32.totalorder %v2322_v46, 1 }
 0x1bf   : > { %p1732_p3 = por %p1731_p2, %p1730_p1 }
 0x1c1   : > { %p1733_p5 = pnand %p1732_p3, %p1728_p0 }
 0x1c2   : > { %v761_v54 = vpop.f32.mrf.mxu2 }
 0x1c3   : > { %v907_v32 = vpop.f32.mrf.mxu3 }
 0x1c4   : > { %964 = vrot.lane.b32.xlu2 %v585_v44, %s1794_s10  ;;  %1028 = vrot.lane.b32.xlu0 %v746_v40, %s1795_s11 }
 0x1c5   : > { %1092 = vrot.lane.b32.xlu1 %v907_v32, %s1796_s18 }
 0x1ca   : > { %v764_v2 = vpop.f32.mrf.mxu2 }
 0x1cb   : > { %v910_v36 = vpop.f32.mrf.mxu3 }
 0x1cc   : > { %966 = vrot.lane.b32.xlu0 %v588_v30, %s1794_s10  ;;  %1094 = vrot.lane.b32.xlu2 %v910_v36, %s1796_s18  ;;  %v609_v30 = vpop.f32.mrf.mxu1  ;;  %v1255_v36 = vsel %vm1239_vm5, 1, %v1789_v0 }
 0x1cd   : > { %1030 = vrot.lane.b32.xlu1 %v749_v29, %s1795_s11 }
 0x1d2   : > { %v767_v13 = vpop.f32.mrf.mxu2 }
 0x1d3   : > { %v913_v43 = vpop.f32.mrf.mxu3 }
 0x1d4   : > { %1032 = vrot.lane.b32.xlu2 %v752_v34, %s1795_s11  ;;  %1096 = vrot.lane.b32.xlu0 %v913_v43, %s1796_s18  ;;  %v1256_v34 = vsel %vm1240_vm3, 1, %v1789_v0 }
 0x1d5   : > { %968 = vrot.lane.b32.xlu1 %v591_v35, %s1794_s10  ;;  %v1254_v35 = vsel %vm1238_vm4, 1, %v1789_v0 }
 0x1da   : > { %v770_v26 = vpop.f32.mrf.mxu2 }
 0x1db   : > { %v916_v49 = vpop.f32.mrf.mxu3 }
 0x1dc   : > { %970 = vrot.lane.b32.xlu2 %v594_v41, %s1794_s10  ;;  %1034 = vrot.lane.b32.xlu0 %v755_v39, %s1795_s11  ;;  %v415_v39 = vpop.f32.mrf.mxu0 }
 0x1dd   : > { %1098 = vrot.lane.b32.xlu1 %v916_v49, %s1796_s18 }
 0x1e3   : > { %v919_v55 = vpop.f32.mrf.mxu3 }
 0x1e4   : > { %972 = vrot.lane.b32.xlu0 %v597_v50, %s1794_s10  ;;  %1100 = vrot.lane.b32.xlu2 %v919_v55, %s1796_s18 }
 0x1e5   : > { %1036 = vrot.lane.b32.xlu1 %v758_v48, %s1795_s11  ;;  %v418_v48 = vpop.f32.mrf.mxu0 }
 0x1eb   : > { %v922_v59 = vpop.f32.mrf.mxu3 }
 0x1ec   : > { %1038 = vrot.lane.b32.xlu2 %v761_v54, %s1795_s11  ;;  %1102 = vrot.lane.b32.xlu0 %v922_v59, %s1796_s18 }
 0x1ed   : > { %974 = vrot.lane.b32.xlu1 %v600_v57, %s1794_s10  ;;  %v421_v60 = vpop.f32.mrf.mxu0 }
 0x1ee   : > { %v1079_v1 = vpop.permute.xlu0 %1078 }
 0x1ef   : > { %v1161_v3 = vsel %vm1160_vm9, %v1144_v62, %v1079_v1 }
 0x1f0   : > { %v1321_v5 = vsel %vm1305_vm10, %v1161_v3, 0.0  ;;  %vm1309_vm10 = vcmp.eq.s32.totalorder %v2298_v28, 1 }
 0x1f1   : > { %1337 = vst [vmem:[%s2348_s23] sm:$0xff] %v1321_v5 }
 0x1f3   : > { %v925_v6 = vpop.f32.mrf.mxu3 }
 0x1f4   : > { %976 = vrot.lane.b32.xlu2 %v603_v4, %s1794_s10  ;;  %1040 = vrot.lane.b32.xlu0 %v764_v2, %s1795_s11 }
 0x1f5   : > { %1104 = vrot.lane.b32.xlu1 %v925_v6, %s1796_s18  ;;  %v424_v5 = vpop.f32.mrf.mxu0 }
 0x1f6   : > { %v1081_v7 = vpop.permute.xlu1 %1080  ;;  %v1083_v8 = vpop.permute.xlu2 %1082 }
 0x1f7   : > { %v1017_v11 = vpop.permute.xlu0 %1016 }
 0x1f8   : > { %v1145_v12 = vsel %vm1143_vm8, %v1128_v10, %v1017_v11 }
 0x1f9   : > { %v1162_v14 = vsel %vm1160_vm9, %v1145_v12, %v1081_v7 }
 0x1fa   : > { %v1322_v16 = vsel %vm1306_vm11, %v1162_v14, 0.0  ;;  %vm1310_vm11 = vcmp.eq.s32.totalorder %v2310_v37, 1 }
 0x1fb   : > { %1338 = vst [vmem:[%s2348_s23 + $0x8] sm:$0xff] %v1322_v16  ;;  %v928_v17 = vpop.f32.mrf.mxu3 }
 0x1fc   : > { %978 = vrot.lane.b32.xlu0 %v606_v15, %s1794_s10  ;;  %1106 = vrot.lane.b32.xlu2 %v928_v17, %s1796_s18 }
 0x1fd   : > { %1042 = vrot.lane.b32.xlu1 %v767_v13, %s1795_s11  ;;  %v427_v13 = vpop.f32.mrf.mxu0 }
 0x1fe   : > { %v1019_v18 = vpop.permute.xlu1 %1018  ;;  %v1021_v19 = vpop.permute.xlu2 %1020 }
 0x1ff   : > { %v955_v20 = vpop.permute.xlu0 %954 }
 0x200   : > { %v1129_v22 = vsel %vm1126_vm7, %v409_v9, %v955_v20 }
 0x201   : > { %v1146_v40 = vsel %vm1143_vm8, %v1129_v22, %v1019_v18 }
 0x202   : > { %v1163_v44 = vsel %vm1160_vm9, %v1146_v40, %v1083_v8 }
 0x203   : > { %v1323_v27 = vsel %vm1307_vm12, %v1163_v44, 0.0  ;;  %v931_v29 = vpop.f32.mrf.mxu3  ;;  %vm1311_vm12 = vcmp.eq.s32.totalorder %v2308_v33, 1 }
 0x204   : > { %1339 = vst [vmem:[%s2348_s23 + $0x10] sm:$0xff] %v1323_v27  ;;  %1044 = vrot.lane.b32.xlu2 %v770_v26, %s1795_s11  ;;  %1108 = vrot.lane.b32.xlu0 %v931_v29, %s1796_s18 }
 0x205   : > { %980 = vrot.lane.b32.xlu1 %v609_v30, %s1794_s10  ;;  %v430_v33 = vpop.f32.mrf.mxu0 }
 0x206   : > { %v959_v32 = vpop.permute.xlu2 %958  ;;  %v957_v42 = vpop.permute.xlu1 %956 }
 0x207   : > { %v1130_v43 = vsel %vm1126_vm7, %v412_v24, %v957_v42  ;;  %v1131_v0 = vsel %vm1126_vm7, %v415_v39, %v959_v32 }
 0x208   : > { %v1147_v50 = vsel %vm1143_vm8, %v1130_v43, %v1021_v19 }
 0x20c   : > { %1303 = vperm.xlu2 %1708, %v1256_v34   ;;  %1297 = vperm.xlu0 %1706, %v1254_v35  }
 0x20d   : > { %1300 = vperm.xlu1 %1707, %v1255_v36   ;;  %v433_v26 = vpop.f32.mrf.mxu0 }
 0x20e   : > { %v1089_v41 = vpop.permute.xlu2 %1088 }
 0x215   : > { %v436_v43 = vpop.f32.mrf.mxu0 }
 0x216   : > { %v1027_v49 = vpop.permute.xlu2 %1026  ;;  %v1085_v53 = vpop.permute.xlu0 %1084 }
 0x217   : > { %v1164_v55 = vsel %vm1160_vm9, %v1147_v50, %v1085_v53 }
 0x218   : > { %v1324_v56 = vsel %vm1308_vm6, %v1164_v55, 0.0 }
 0x219   : > { %1340 = vst [vmem:[%s2348_s23 + $0x18] sm:$0xff] %v1324_v56 }
 0x21d   : > { %v439_v56 = vpop.f32.mrf.mxu0 }
 0x21e   : > { %v965_v54 = vpop.permute.xlu2 %964  ;;  %v1023_v57 = vpop.permute.xlu0 %1022 }
 0x21f   : > { %v1087_v45 = vpop.permute.xlu1 %1086  ;;  %v1148_v59 = vsel %vm1143_vm8, %v1131_v0, %v1023_v57  ;;  %v1134_v37 = vsel %vm1126_vm7, %v424_v5, %v965_v54 }
 0x220   : > { %v1165_v61 = vsel %vm1160_vm9, %v1148_v59, %v1087_v45 }
 0x221   : > { %v1325_v62 = vsel %vm1309_vm10, %v1165_v61, 0.0 }
 0x222   : > { %1341 = vst [vmem:[%s2348_s23 + $0x20] sm:$0xff] %v1325_v62 }
 0x225   : > { %v442_v52 = vpop.f32.mrf.mxu0 }
 0x226   : > { %v961_v31 = vpop.permute.xlu0 %960  ;;  %v1095_v1 = vpop.permute.xlu2 %1094 }
 0x227   : > { %v1025_v63 = vpop.permute.xlu1 %1024  ;;  %v1132_v2 = vsel %vm1126_vm7, %v418_v48, %v961_v31 }
 0x228   : > { %v1149_v3 = vsel %vm1143_vm8, %v1132_v2, %v1025_v63 }
 0x229   : > { %v1166_v4 = vsel %vm1160_vm9, %v1149_v3, %v1089_v41 }
 0x22a   : > { %v1326_v6 = vsel %vm1310_vm11, %v1166_v4, 0.0 }
 0x22b   : > { %1342 = vst [vmem:[%s2348_s23 + $0x28] sm:$0xff] %v1326_v6 }
 0x22e   : > { %v1091_v28 = vpop.permute.xlu0 %1090  ;;  %v1033_v9 = vpop.permute.xlu2 %1032 }
 0x22f   : > { %v963_v7 = vpop.permute.xlu1 %962 }
 0x230   : > { %v1133_v8 = vsel %vm1126_vm7, %v421_v60, %v963_v7 }
 0x231   : > { %v1150_v10 = vsel %vm1143_vm8, %v1133_v8, %v1027_v49 }
 0x232   : > { %v1167_v11 = vsel %vm1160_vm9, %v1150_v10, %v1091_v28 }
 0x233   : > { %v1327_v12 = vsel %vm1311_vm12, %v1167_v11, 0.0 }
 0x234   : > { %1343 = vst [vmem:[%s2348_s23 + $0x30] sm:$0xff] %v1327_v12 }
 0x236   : > { %v1029_v14 = vpop.permute.xlu0 %1028  ;;  %v971_v19 = vpop.permute.xlu2 %970 }
 0x237   : > { %v1093_v15 = vpop.permute.xlu1 %1092  ;;  %v1151_v16 = vsel %vm1143_vm8, %v1134_v37, %v1029_v14  ;;  %v1137_v46 = vsel %vm1126_vm7, %v433_v26, %v971_v19 }
 0x238   : > { %v1168_v17 = vsel %vm1160_vm9, %v1151_v16, %v1093_v15 }
 0x239   : > { %v1328_v18 = vsel %vm1312_vm13, %v1168_v17, 0.0 }
 0x23a   : > { %1344 = vst [vmem:[%s2348_s23 + $0x38] sm:$0xff] %v1328_v18 }
 0x23e   : > { %v967_v20 = vpop.permute.xlu0 %966  ;;  %v1101_v51 = vpop.permute.xlu2 %1100 }
 0x23f   : > { %v1031_v21 = vpop.permute.xlu1 %1030  ;;  %v1135_v22 = vsel %vm1126_vm7, %v427_v13, %v967_v20 }
 0x240   : > { %v1152_v23 = vsel %vm1143_vm8, %v1135_v22, %v1031_v21 }
 0x241   : > { %v1169_v24 = vsel %vm1160_vm9, %v1152_v23, %v1095_v1  ;;  %v445_v1 = vpop.f32.mrf.mxu0 }
 0x242   : > { %v1329_v40 = vsel %vm1313_vm14, %v1169_v24, 0.0 }
 0x243   : > { %1345 = vst [vmem:[%s2348_s23 + $0x40] sm:$0xff] %v1329_v40 }
 0x246   : > { %v1097_v25 = vpop.permute.xlu0 %1096  ;;  %v1039_v35 = vpop.permute.xlu2 %1038 }
 0x247   : > { %v969_v44 = vpop.permute.xlu1 %968 }
 0x248   : > { %v1136_v27 = vsel %vm1126_vm7, %v430_v33, %v969_v44 }
 0x249   : > { %v1153_v29 = vsel %vm1143_vm8, %v1136_v27, %v1033_v9  ;;  %v448_v4 = vpop.f32.mrf.mxu0 }
 0x24a   : > { %v1170_v30 = vsel %vm1160_vm9, %v1153_v29, %v1097_v25 }
 0x24b   : > { %v1330_v32 = vsel %vm1314_vm15, %v1170_v30, 0.0 }
 0x24c   : > { %1346 = vst [vmem:[%s2348_s23 + $0x48] sm:$0xff] %v1330_v32 }
 0x24e   : > { %v1035_v34 = vpop.permute.xlu0 %1034  ;;  %v977_v53 = vpop.permute.xlu2 %976 }
 0x24f   : > { %v1099_v36 = vpop.permute.xlu1 %1098  ;;  %v1154_v39 = vsel %vm1143_vm8, %v1137_v46, %v1035_v34  ;;  %v1140_v10 = vsel %vm1126_vm7, %v442_v52, %v977_v53 }
 0x250   : > { %v1171_v41 = vsel %vm1160_vm9, %v1154_v39, %v1099_v36 }
 0x251   : > { %v1331_v42 = vsel %vm1315_vm0, %v1171_v41, 0.0 }
 0x252   : > { %1347 = vst [vmem:[%s2348_s23 + $0x50] sm:$0xff] %v1331_v42 }
 0x256   : > { %v973_v38 = vpop.permute.xlu0 %972  ;;  %v1107_v60 = vpop.permute.xlu2 %1106 }
 0x257   : > { %v1037_v48 = vpop.permute.xlu1 %1036  ;;  %v1138_v49 = vsel %vm1126_vm7, %v436_v43, %v973_v38 }
 0x258   : > { %v1155_v50 = vsel %vm1143_vm8, %v1138_v49, %v1037_v48 }
 0x259   : > { %v1172_v55 = vsel %vm1160_vm9, %v1155_v50, %v1101_v51 }
 0x25a   : > { %v1332_v0 = vsel %vm1316_vm1, %v1172_v55, 0.0 }
 0x25b   : > { %1348 = vst [vmem:[%s2348_s23 + $0x58] sm:$0xff] %v1332_v0 }
 0x25e   : > { %v1103_v58 = vpop.permute.xlu0 %1102  ;;  %v1045_v63 = vpop.permute.xlu2 %1044 }
 0x25f   : > { %v975_v54 = vpop.permute.xlu1 %974 }
 0x260   : > { %v1139_v57 = vsel %vm1126_vm7, %v439_v56, %v975_v54 }
 0x261   : > { %v1156_v45 = vsel %vm1143_vm8, %v1139_v57, %v1039_v35 }
 0x262   : > { %v1173_v59 = vsel %vm1160_vm9, %v1156_v45, %v1103_v58 }
 0x263   : > { %v1333_v61 = vsel %vm1317_vm2, %v1173_v59, 0.0 }
 0x264   : > { %1349 = vst [vmem:[%s2348_s23 + $0x60] sm:$0xff] %v1333_v61 }
 0x266   : > { %v1041_v62 = vpop.permute.xlu0 %1040  ;;  %v1304_v6 = vpop.permute.xlu2 %1303 }
 0x267   : > { %v1105_v31 = vpop.permute.xlu1 %1104  ;;  %vm1320_vm3 = vcmp.eq.s32.totalorder %v1304_v6, 1  ;;  %v1157_v12 = vsel %vm1143_vm8, %v1140_v10, %v1041_v62 }
 0x268   : > { %v1174_v15 = vsel %vm1160_vm9, %v1157_v12, %v1105_v31 }
 0x26e   : > { %v979_v2 = vpop.permute.xlu0 %978 }
 0x26f   : > { %v1043_v3 = vpop.permute.xlu1 %1042  ;;  %v1141_v8 = vsel %vm1126_vm7, %v445_v1, %v979_v2 }
 0x270   : > { %v1158_v13 = vsel %vm1143_vm8, %v1141_v8, %v1043_v3 }
 0x271   : > { %v1175_v16 = vsel %vm1160_vm9, %v1158_v13, %v1107_v60 }
 0x276   : > { %v1109_v5 = vpop.permute.xlu0 %1108 }
 0x277   : > { %v981_v28 = vpop.permute.xlu1 %980 }
 0x278   : > { %v1142_v47 = vsel %vm1126_vm7, %v448_v4, %v981_v28 }
 0x279   : > { %v1159_v7 = vsel %vm1143_vm8, %v1142_v47, %v1045_v63 }
 0x27a   : > { %v1176_v9 = vsel %vm1160_vm9, %v1159_v7, %v1109_v5 }
 0x27b   : > { %v1336_v11 = vsel %vm1320_vm3, %v1176_v9, 0.0 }
 0x27c   : > { %1352 = vst [vmem:[%s2348_s23 + $0x78] sm:$0xff] %v1336_v11 }
 0x27e   : > { %v1298_v37 = vpop.permute.xlu0 %1297 }
 0x27f   : > { %v1301_v14 = vpop.permute.xlu1 %1300  ;;  %vm1318_vm4 = vcmp.eq.s32.totalorder %v1298_v37, 1 }
 0x280   : > { %vm1319_vm7 = vcmp.eq.s32.totalorder %v1301_v14, 1  ;;  %v1334_v17 = vsel %vm1318_vm4, %v1174_v15, 0.0 }
 0x281   : > { %v1335_v18 = vsel %vm1319_vm7, %v1175_v16, 0.0  ;;  %1350 = vst [vmem:[%s2348_s23 + $0x68] sm:$0xff] %v1334_v17 }
 0x282   : > { %1351 = vst [vmem:[%s2348_s23 + $0x70] sm:$0xff] %v1335_v18 }
 0x283   : > { %1736 = shalt.err (!%p1733_p5)
}
 0x284   : > { %s1797_s18 = smov 128   ;;  %s1798_s19 = smov 8  }
 0x285   : > { %1629 = dma.vmem_to_hbm [thread:$0]  (%p1859_p4), %s1369_s15, 2048, %s1371_s30, %s1354_s4, %s1797_s18, %s1797_s18, %s1798_s19  }
 0x286 PF: > { %p1635_p6 = scmp.ge.s32.totalorder %s1787_s17, 2  ;;  %s1385_s21 = sand.u32 1, %s1767_s12  }
 0x287   : > { %s1386_s23 = scalar_lea.sflag [#allocation3], %s1385_s21 }
 0x288   : > { %p1632_p7 = pnand %p1635_p6, %p1866_p8 }
 0x28a   : > { %p1633_p9 = pneg %p1632_p7 }
 0x28c   : > { %1762 = dma.done.wait (%p1633_p9), %s1386_s23, 2048  }
 0x28d   : > { %1764 = vsyncadd (%p1633_p9), %s1386_s23, 4294965248  ;;  %s16_s17 = sadd.s32 1, %s1787_s17   ;;  %s2483_s12 = smov %s1771_s13 }
 0x28e   : > { %p13_p10 = scmp.ge.s32.totalorder %s16_s17, 4   ;;  %s2484_s13 = smov %s1775_s14 }
 0x28f   : > { %s2485_s14 = smov %s1872_s25  ;;  %s2486_s15 = smov %s1783_s16 }
 0x290   : > { %s2487_s16 = smov %s2489_s20  ;;  %15 = sbr.rel (!%p13_p10) target bundleno = 4 (0x4), region = 73 }
 0x295   :  { %1392 = vsyncpa [#allocation3], 1 }
 0x296   :  { %1394 = vsyncpa [#allocation3 + $0x1], 1 }

</bundles_post_ra>
